<compile_context>
chip_gen: v7x
topology: tpu7x:2x2x1
jax: 0.10.0
libtpu: 0.0.40
codegen_flags: <defaults>
</compile_context>

<pallas_src>
import functools

import jax
import jax.numpy as jnp
from jax.experimental import pallas as pl
from jax.experimental.pallas import tpu as pltpu


_MIN_ROWS_FOR_KERNEL = 128   # below this, XLA's fused GEMM path beats kernel launch cost
_ROW_TILE_CAP = 2048         # rows per grid step (VMEM footprint ~1.5 KiB/row incl. buffers)


# ----------------------------------------------------------------------------- kernel

def _encoder_kernel(x_ref,
                    w_inres_ref, b_inres_ref,
                    w_h0_ref, b_h0_ref,
                    w_h1_ref, b_h1_ref,
                    w_out_ref, b_out_ref,
                    out_ref,
                    *, hidden_pad):
    """Fused MLP sequence encoder (+ residual input projection) and output linear.

    x_ref   : (TM, D_in)     bf16 flattened masked [history | future] sequence per agent
    out_ref : (TM, LAT_PAD)  f32 lane-dense (128-multiple) padded latent output
    Weights : bf16 (matmul operands), biases f32; hidden padded to hidden_pad (x128).
    """
    x = x_ref[...]                                                   # bf16

    # Fused input + residual projection: one (TM, D_in) @ (D_in, 2*Hp) bf16 matmul, f32 acc.
    h_all = (jnp.dot(x, w_inres_ref[...], preferred_element_type=jnp.float32)
             + b_inres_ref[...])
    h = jnp.maximum(h_all[:, :hidden_pad], 0.0)       # ReLU(x @ w_in + b_in)   (vreg-aligned)
    res = h_all[:, hidden_pad:]                       # x @ w_res + b_res       (residual path)

    # SequenceEncoderMLP hidden layers (num_hidden_layers = 2), ReLU activations.
    h = jnp.maximum(
        jnp.dot(h.astype(jnp.bfloat16), w_h0_ref[...],
                preferred_element_type=jnp.float32) + b_h0_ref[...], 0.0)
    h = jnp.maximum(
        jnp.dot(h.astype(jnp.bfloat16), w_h1_ref[...],
                preferred_element_type=jnp.float32) + b_h1_ref[...], 0.0)

    # is_mlp_residual: add the skip projection.
    h = h + res

    # BaseEncoderNN._output_layer : Linear(hidden_dim, latent_dim), zero-padded to 128 lanes.
    out_ref[...] = (jnp.dot(h.astype(jnp.bfloat16), w_out_ref[...],
                            preferred_element_type=jnp.float32)
                    + b_out_ref[...])


def _run_encoder_kernel(x_flat, packed, hidden_pad, latent_pad, tm):
    """x_flat: (M_pad, D_in) bf16 with M_pad a multiple of tm (and tm a multiple of 8)."""
    m_pad, d_in = x_flat.shape

    full = lambda a: pl.BlockSpec(a.shape, lambda i: (0,) * a.ndim)

    weight_order = ["w_inres", "b_inres", "w_h0", "b_h0", "w_h1", "b_h1",
                    "w_out", "b_out"]

    grid = (m_pad // tm,)
    in_specs = [pl.BlockSpec((tm, d_in), lambda i: (i, 0))]
    in_specs += [full(packed[k]) for k in weight_order]

    out = pl.pallas_call(
        functools.partial(_encoder_kernel, hidden_pad=hidden_pad),
        out_shape=jax.ShapeDtypeStruct((m_pad, latent_pad), jnp.float32),
        grid_spec=pltpu.PrefetchScalarGridSpec(
            num_scalar_prefetch=0,
            grid=grid,
            in_specs=in_specs,
            out_specs=pl.BlockSpec((tm, latent_pad), lambda i: (i, 0)),
        ),
        compiler_params=pltpu.CompilerParams(dimension_semantics=("parallel",)),
    )(x_flat, *[packed[k] for k in weight_order])
    return out


# ----------------------------------------------------------------------------- packing

def _pack_params(params, hidden_pad, latent_pad):
    """Pad hidden/latent to lane-dense widths, fuse w_in||w_res, cast matmul operands bf16."""
    hidden_dim = params["w_in"].shape[1]
    latent_dim = params["w_out"].shape[1]
    ph = hidden_pad - hidden_dim
    pl_cols = latent_pad - latent_dim

    pad_c = lambda a, c: jnp.pad(a, ((0, 0), (0, c)))
    pad_rc = lambda a, r, c: jnp.pad(a, ((0, r), (0, c)))

    w_inres = jnp.concatenate([pad_c(params["w_in"], ph),
                               pad_c(params["w_res"], ph)], axis=1)    # (D_in, 2*Hp)
    b_inres = jnp.concatenate([pad_c(params["b_in"], ph),
                               pad_c(params["b_res"], ph)], axis=1)    # (1, 2*Hp)

    bf16 = lambda a: a.astype(jnp.bfloat16)
    return {
        "w_inres": bf16(w_inres),
        "b_inres": b_inres.astype(jnp.float32),
        "w_h0": bf16(pad_rc(params["w_h0"], ph, ph)),
        "b_h0": pad_c(params["b_h0"], ph).astype(jnp.float32),
        "w_h1": bf16(pad_rc(params["w_h1"], ph, ph)),
        "b_h1": pad_c(params["b_h1"], ph).astype(jnp.float32),
        "w_out": bf16(pad_rc(params["w_out"], ph, pl_cols)),
        "b_out": pad_c(params["b_out"], pl_cols).astype(jnp.float32),
    }


# ----------------------------------------------------------------------------- tiling

def _tensorcores_per_chip():
    """Best-effort detection of TensorCores sharing a grid (v7x = 2, v5e/v6e = 1)."""
    try:
        kind = getattr(jax.devices()[0], "device_kind", "").lower()
        if "v7" in kind:
            return 2
    except Exception:
        pass
    return 1


def _choose_tiling(m, cap, min_steps):
    """Row tile tm (multiple of 8, <= cap) and padded row count; padding <= ~8*steps rows."""
    m_pad8 = ((m + 7) // 8) * 8
    steps = max(min_steps, -(-m_pad8 // cap))          # ceil(m_pad8 / cap)
    tm = -(-m_pad8 // steps)                           # ceil(m_pad8 / steps)
    tm = ((tm + 7) // 8) * 8
    return tm, steps * tm


# ----------------------------------------------------------------------------- dense path

def _dense_forward(params, flat):
    """Plain XLA dot chain (small-M bypass; also the semantic reference)."""
    h = jax.nn.relu(flat @ params["w_in"] + params["b_in"])
    h = jax.nn.relu(h @ params["w_h0"] + params["b_h0"])
    h = jax.nn.relu(h @ params["w_h1"] + params["b_h1"])
    h = h + flat @ params["w_res"] + params["b_res"]
    return h @ params["w_out"] + params["b_out"]


# ----------------------------------------------------------------------------- wrapper

def cvae_encoder_forward(params, x, mask_x, encoded_absolute, encoded_map, mask_map,
                         y, mask_y):
    """Mirror of CVAEEncoder.forward for the configuration documented above.

    Returns the Gaussian latent distribution as (mean, log_std), each
    (batch, num_agents, latent_dim // 2).
    """
    b, a, t, s = x.shape
    tf = y.shape[2]
    latent_dim = params["w_out"].shape[1]
    hidden_dim = params["w_in"].shape[1]
    hidden_pad = ((hidden_dim + 127) // 128) * 128     # vreg-aligned split point
    latent_pad = ((latent_dim + 127) // 128) * 128     # lane-dense output width

    # encode_agents glue: mask, concatenate history+future along time, flatten per agent.
    xm = x * mask_x[..., None].astype(x.dtype)
    ym = y * mask_y[..., None].astype(y.dtype)
    seq = jnp.concatenate([xm, ym], axis=2)            # (B, A, T+Tf, S)
    flat = seq.reshape(b * a, (t + tf) * s)            # (M, D_in)

    # mask_agent = mask_x.any(-1)  -- only consumed by the interaction module; with the
    # identity interaction branch it has no effect on the output.
    _ = jnp.any(mask_x, axis=-1)

    m = b * a
    if m < _MIN_ROWS_FOR_KERNEL:
        # Kernel launch overhead would dominate; use the fused XLA GEMM chain.
        latent_output = _dense_forward(params, flat).reshape(b, a, latent_dim)
        mean, log_std = jnp.split(latent_output, 2, axis=-1)
        return mean, log_std

    # Row tiling: largest tiles up to the cap; on v7x keep >=2 grid steps so both
    # TensorCores get a share; padding is bounded to <~8 rows per grid step.
    cores = _tensorcores_per_chip()
    min_steps = cores if m >= 8 * cores else 1
    tm, m_pad = _choose_tiling(m, cap=_ROW_TILE_CAP, min_steps=min_steps)

    flat_bf16 = flat.astype(jnp.bfloat16)
    if m_pad != m:
        flat_bf16 = jnp.pad(flat_bf16, ((0, m_pad - m), (0, 0)))

    packed = _pack_params(params, hidden_pad, latent_pad)

    latent_output = _run_encoder_kernel(flat_bf16, packed, hidden_pad, latent_pad, tm)
    latent_output = latent_output[:m, :latent_dim].reshape(b, a, latent_dim)

    # _latent_distribution_creator: Gaussian latent -> split into mean / log_std.
    mean, log_std = jnp.split(latent_output, 2, axis=-1)
    return mean, log_std


def _reference_forward(params, x, mask_x, y, mask_y):
    """Pure-JAX f32 reference of the same forward for a correctness check."""
    b, a, t, s = x.shape
    tf = y.shape[2]
    xm = x * mask_x[..., None].astype(x.dtype)
    ym = y * mask_y[..., None].astype(y.dtype)
    flat = jnp.concatenate([xm, ym], axis=2).reshape(b * a, (t + tf) * s)
    out = _dense_forward(params, flat).reshape(b, a, -1)
    return jnp.split(out, 2, axis=-1)


# ----------------------------------------------------------------------------- params

def init_params(key, d_in, hidden_dim, latent_dim):
    ks = jax.random.split(key, 5)
    scale = lambda fan_in: 1.0 / jnp.sqrt(jnp.float32(fan_in))
    return {
        "w_in":  jax.random.normal(ks[0], (d_in, hidden_dim), jnp.float32) * scale(d_in),
        "b_in":  jnp.zeros((1, hidden_dim), jnp.float32),
        "w_h0":  jax.random.normal(ks[1], (hidden_dim, hidden_dim), jnp.float32) * scale(hidden_dim),
        "b_h0":  jnp.zeros((1, hidden_dim), jnp.float32),
        "w_h1":  jax.random.normal(ks[2], (hidden_dim, hidden_dim), jnp.float32) * scale(hidden_dim),
        "b_h1":  jnp.zeros((1, hidden_dim), jnp.float32),
        "w_res": jax.random.normal(ks[3], (d_in, hidden_dim), jnp.float32) * scale(d_in),
        "b_res": jnp.zeros((1, hidden_dim), jnp.float32),
        "w_out": jax.random.normal(ks[4], (hidden_dim, latent_dim), jnp.float32) * scale(hidden_dim),
        "b_out": jnp.zeros((1, latent_dim), jnp.float32),
    }


# ----------------------------------------------------------------------------- main

if __name__ == "__main__":
    # Small shapes consistent with the module's forward signature.
    # A=64 gives M = B*A = 128 rows -> exercises the Pallas kernel path.
    B, A, T, TF, S = 2, 64, 8, 8, 4         # batch, agents, hist steps, future steps, state
    HIDDEN, LATENT = 32, 16                 # model.hidden_dim, model.latent_dim (mean+log_std)
    NOBJ, MAPF, ABSF = 6, 32, 32

    key = jax.random.PRNGKey(0)
    kx, ky, kabs, kmap, kp = jax.random.split(key, 5)

    x = jax.random.normal(kx, (B, A, T, S), jnp.float32)
    y = jax.random.normal(ky, (B, A, TF, S), jnp.float32)
    mask_x = jnp.ones((B, A, T), jnp.bool_).at[:, -1, T // 2:].set(False)
    mask_y = jnp.ones((B, A, TF), jnp.bool_).at[:, 0, TF // 2:].set(False)
    encoded_absolute = jax.random.normal(kabs, (B, A, ABSF), jnp.float32)   # unused: identity interaction
    encoded_map = jax.random.normal(kmap, (B, NOBJ, MAPF), jnp.float32)     # unused: identity interaction
    mask_map = jnp.ones((B, NOBJ), jnp.bool_)                               # unused: identity interaction

    params = init_params(kp, d_in=(T + TF) * S, hidden_dim=HIDDEN, latent_dim=LATENT)

    fwd = jax.jit(cvae_encoder_forward)

    # Kernel path (M = 128).
    mean, log_std = fwd(params, x, mask_x, encoded_absolute, encoded_map, mask_map, y, mask_y)
    jax.block_until_ready((mean, log_std))

    ref_mean, ref_log_std = _reference_forward(params, x, mask_x, y, mask_y)
    assert mean.shape == (B, A, LATENT // 2) and log_std.shape == (B, A, LATENT // 2)
    # bf16 matmul operands with f32 accumulation -> loosened tolerance vs. the f32 reference.
    assert jnp.allclose(mean, ref_mean, atol=5e-2, rtol=5e-2)
    assert jnp.allclose(log_std, ref_log_std, atol=5e-2, rtol=5e-2)

    # Tiny-M bypass path (M = 8): must match the f32 reference exactly.
    xs, ys = x[:, :4], y[:, :4]
    mxs, mys = mask_x[:, :4], mask_y[:, :4]
    m2, s2 = fwd(params, xs, mxs, encoded_absolute[:, :4], encoded_map, mask_map, ys, mys)
    rm2, rs2 = _reference_forward(params, xs, mxs, ys, mys)
    assert jnp.allclose(m2, rm2, atol=1e-5, rtol=1e-5)
    assert jnp.allclose(s2, rs2, atol=1e-5, rtol=1e-5)

    print("KERNEL_OK")
</pallas_src>

<mosaic_0001>
module attributes {stable_mosaic.version = 11 : i64} {
  func.func @_encoder_kernel(%arg0: i32, %arg1: memref<128x64xbf16, #tpu.memory_space<vmem>>, %arg2: memref<64x256xbf16, #tpu.memory_space<vmem>>, %arg3: memref<1x256xf32, #tpu.memory_space<vmem>>, %arg4: memref<128x128xbf16, #tpu.memory_space<vmem>>, %arg5: memref<1x128xf32, #tpu.memory_space<vmem>>, %arg6: memref<128x128xbf16, #tpu.memory_space<vmem>>, %arg7: memref<1x128xf32, #tpu.memory_space<vmem>>, %arg8: memref<128x128xbf16, #tpu.memory_space<vmem>>, %arg9: memref<1x128xf32, #tpu.memory_space<vmem>>, %arg10: memref<128x128xf32, #tpu.memory_space<vmem>>) attributes {dimension_semantics = [#tpu.dimension_semantics<parallel>], iteration_bounds = array<i64: 1>, scalar_prefetch = 0 : i64, scratch_operands = 0 : i64, tpu.core_type = #tpu.core_type<tc>, window_params = [{transform_indices = @transform_0, window_bounds = array<i64: 128, 64>}, {pipeline_mode = #tpu.pipeline_mode<synchronous>, transform_indices = @transform_1, window_bounds = array<i64: 64, 256>}, {pipeline_mode = #tpu.pipeline_mode<synchronous>, transform_indices = @transform_2, window_bounds = array<i64: 1, 256>}, {pipeline_mode = #tpu.pipeline_mode<synchronous>, transform_indices = @transform_3, window_bounds = array<i64: 128, 128>}, {pipeline_mode = #tpu.pipeline_mode<synchronous>, transform_indices = @transform_4, window_bounds = array<i64: 1, 128>}, {pipeline_mode = #tpu.pipeline_mode<synchronous>, transform_indices = @transform_5, window_bounds = array<i64: 128, 128>}, {pipeline_mode = #tpu.pipeline_mode<synchronous>, transform_indices = @transform_6, window_bounds = array<i64: 1, 128>}, {pipeline_mode = #tpu.pipeline_mode<synchronous>, transform_indices = @transform_7, window_bounds = array<i64: 128, 128>}, {pipeline_mode = #tpu.pipeline_mode<synchronous>, transform_indices = @transform_8, window_bounds = array<i64: 1, 128>}, {transform_indices = @transform_9, window_bounds = array<i64: 128, 128>}]} {
    %c0 = arith.constant 0 : index
    %c0_0 = arith.constant 0 : index
    %0 = vector.load %arg1[%c0, %c0_0] : memref<128x64xbf16, #tpu.memory_space<vmem>>, vector<128x64xbf16>
    %c0_1 = arith.constant 0 : index
    %c0_2 = arith.constant 0 : index
    %1 = vector.load %arg2[%c0_1, %c0_2] : memref<64x256xbf16, #tpu.memory_space<vmem>>, vector<64x256xbf16>
    %cst = arith.constant dense<0.000000e+00> : vector<128x256xf32>
    %2 = tpu.matmul %0, %1, %cst {dimension_numbers = #tpu.dot_dimension_numbers<[1], [0], [0], [1], [0, 0, 1, 1], [], []>} : vector<128x64xbf16>, vector<64x256xbf16>, vector<128x256xf32> -> vector<128x256xf32>
    %c0_3 = arith.constant 0 : index
    %c0_4 = arith.constant 0 : index
    %3 = vector.load %arg3[%c0_3, %c0_4] : memref<1x256xf32, #tpu.memory_space<vmem>>, vector<1x256xf32>
    %4 = vector.broadcast %3 : vector<1x256xf32> to vector<128x256xf32>
    %5 = arith.addf %2, %4 : vector<128x256xf32>
    %6 = vector.extract_strided_slice %5 {offsets = [0, 0], sizes = [128, 128], strides = [1, 1]} : vector<128x256xf32> to vector<128x128xf32>
    %cst_5 = arith.constant 0.000000e+00 : f32
    %7 = vector.broadcast %cst_5 : f32 to vector<128x128xf32>
    %8 = arith.maximumf %6, %7 : vector<128x128xf32>
    %9 = vector.extract_strided_slice %5 {offsets = [0, 128], sizes = [128, 128], strides = [1, 1]} : vector<128x256xf32> to vector<128x128xf32>
    %10 = arith.truncf %8 : vector<128x128xf32> to vector<128x128xbf16>
    %c0_6 = arith.constant 0 : index
    %c0_7 = arith.constant 0 : index
    %11 = vector.load %arg4[%c0_6, %c0_7] : memref<128x128xbf16, #tpu.memory_space<vmem>>, vector<128x128xbf16>
    %cst_8 = arith.constant dense<0.000000e+00> : vector<128x128xf32>
    %12 = tpu.matmul %10, %11, %cst_8 {dimension_numbers = #tpu.dot_dimension_numbers<[1], [0], [0], [1], [0, 0, 1, 1], [], []>} : vector<128x128xbf16>, vector<128x128xbf16>, vector<128x128xf32> -> vector<128x128xf32>
    %c0_9 = arith.constant 0 : index
    %c0_10 = arith.constant 0 : index
    %13 = vector.load %arg5[%c0_9, %c0_10] : memref<1x128xf32, #tpu.memory_space<vmem>>, vector<1x128xf32>
    %14 = vector.broadcast %13 : vector<1x128xf32> to vector<128x128xf32>
    %15 = arith.addf %12, %14 : vector<128x128xf32>
    %cst_11 = arith.constant 0.000000e+00 : f32
    %16 = vector.broadcast %cst_11 : f32 to vector<128x128xf32>
    %17 = arith.maximumf %15, %16 : vector<128x128xf32>
    %18 = arith.truncf %17 : vector<128x128xf32> to vector<128x128xbf16>
    %c0_12 = arith.constant 0 : index
    %c0_13 = arith.constant 0 : index
    %19 = vector.load %arg6[%c0_12, %c0_13] : memref<128x128xbf16, #tpu.memory_space<vmem>>, vector<128x128xbf16>
    %cst_14 = arith.constant dense<0.000000e+00> : vector<128x128xf32>
    %20 = tpu.matmul %18, %19, %cst_14 {dimension_numbers = #tpu.dot_dimension_numbers<[1], [0], [0], [1], [0, 0, 1, 1], [], []>} : vector<128x128xbf16>, vector<128x128xbf16>, vector<128x128xf32> -> vector<128x128xf32>
    %c0_15 = arith.constant 0 : index
    %c0_16 = arith.constant 0 : index
    %21 = vector.load %arg7[%c0_15, %c0_16] : memref<1x128xf32, #tpu.memory_space<vmem>>, vector<1x128xf32>
    %22 = vector.broadcast %21 : vector<1x128xf32> to vector<128x128xf32>
    %23 = arith.addf %20, %22 : vector<128x128xf32>
    %cst_17 = arith.constant 0.000000e+00 : f32
    %24 = vector.broadcast %cst_17 : f32 to vector<128x128xf32>
    %25 = arith.maximumf %23, %24 : vector<128x128xf32>
    %26 = arith.addf %25, %9 : vector<128x128xf32>
    %27 = arith.truncf %26 : vector<128x128xf32> to vector<128x128xbf16>
    %c0_18 = arith.constant 0 : index
    %c0_19 = arith.constant 0 : index
    %28 = vector.load %arg8[%c0_18, %c0_19] : memref<128x128xbf16, #tpu.memory_space<vmem>>, vector<128x128xbf16>
    %cst_20 = arith.constant dense<0.000000e+00> : vector<128x128xf32>
    %29 = tpu.matmul %27, %28, %cst_20 {dimension_numbers = #tpu.dot_dimension_numbers<[1], [0], [0], [1], [0, 0, 1, 1], [], []>} : vector<128x128xbf16>, vector<128x128xbf16>, vector<128x128xf32> -> vector<128x128xf32>
    %c0_21 = arith.constant 0 : index
    %c0_22 = arith.constant 0 : index
    %30 = vector.load %arg9[%c0_21, %c0_22] : memref<1x128xf32, #tpu.memory_space<vmem>>, vector<1x128xf32>
    %31 = vector.broadcast %30 : vector<1x128xf32> to vector<128x128xf32>
    %32 = arith.addf %29, %31 : vector<128x128xf32>
    %c0_23 = arith.constant 0 : index
    %c0_24 = arith.constant 0 : index
    %33 = vector.load %arg10[%c0_23, %c0_24] : memref<128x128xf32, #tpu.memory_space<vmem>>, vector<128x128xf32>
    tpu.vector_store %arg10[%c0_23, %c0_24], %32 {strides = array<i32>} : memref<128x128xf32, #tpu.memory_space<vmem>>, vector<128x128xf32>,
    return
  }
  func.func @transform_0(%arg0: i32) -> (i32, i32) {
    %c0_i32 = arith.constant 0 : i32
    %c0_i32_0 = arith.constant 0 : i32
    return %arg0, %c0_i32 : i32, i32
  }
  func.func @transform_1(%arg0: i32) -> (i32, i32) {
    %c0_i32 = arith.constant 0 : i32
    %c0_i32_0 = arith.constant 0 : i32
    %c0_i32_1 = arith.constant 0 : i32
    return %c0_i32, %c0_i32_0 : i32, i32
  }
  func.func @transform_2(%arg0: i32) -> (i32, i32) {
    %c0_i32 = arith.constant 0 : i32
    %c0_i32_0 = arith.constant 0 : i32
    %c0_i32_1 = arith.constant 0 : i32
    return %c0_i32, %c0_i32_0 : i32, i32
  }
  func.func @transform_3(%arg0: i32) -> (i32, i32) {
    %c0_i32 = arith.constant 0 : i32
    %c0_i32_0 = arith.constant 0 : i32
    %c0_i32_1 = arith.constant 0 : i32
    return %c0_i32, %c0_i32_0 : i32, i32
  }
  func.func @transform_4(%arg0: i32) -> (i32, i32) {
    %c0_i32 = arith.constant 0 : i32
    %c0_i32_0 = arith.constant 0 : i32
    %c0_i32_1 = arith.constant 0 : i32
    return %c0_i32, %c0_i32_0 : i32, i32
  }
  func.func @transform_5(%arg0: i32) -> (i32, i32) {
    %c0_i32 = arith.constant 0 : i32
    %c0_i32_0 = arith.constant 0 : i32
    %c0_i32_1 = arith.constant 0 : i32
    return %c0_i32, %c0_i32_0 : i32, i32
  }
  func.func @transform_6(%arg0: i32) -> (i32, i32) {
    %c0_i32 = arith.constant 0 : i32
    %c0_i32_0 = arith.constant 0 : i32
    %c0_i32_1 = arith.constant 0 : i32
    return %c0_i32, %c0_i32_0 : i32, i32
  }
  func.func @transform_7(%arg0: i32) -> (i32, i32) {
    %c0_i32 = arith.constant 0 : i32
    %c0_i32_0 = arith.constant 0 : i32
    %c0_i32_1 = arith.constant 0 : i32
    return %c0_i32, %c0_i32_0 : i32, i32
  }
  func.func @transform_8(%arg0: i32) -> (i32, i32) {
    %c0_i32 = arith.constant 0 : i32
    %c0_i32_0 = arith.constant 0 : i32
    %c0_i32_1 = arith.constant 0 : i32
    return %c0_i32, %c0_i32_0 : i32, i32
  }
  func.func @transform_9(%arg0: i32) -> (i32, i32) {
    %c0_i32 = arith.constant 0 : i32
    %c0_i32_0 = arith.constant 0 : i32
    return %arg0, %c0_i32 : i32, i32
  }
}

</mosaic_0001>

<bundles_post_ra>
// kernel: cvae_encoder_forward.1
= control target key start
LH: loop header
LB: loop body
LE: loop exit
PB: predicated region body
PF: predicated region fallthrough
CT: control target
= control target key end

     0   :  { %v1155_v1 = vmov 0   ;;  %vm149_vm0 = vcmask 523264   ;;  %v59_v26 = vlaneseq  ;;  %s1522_s1 = inlined_call_operand.vmem [shape: bf16[64,256], index: 1, kind: input, shape index: {}]   ;;  %s1523_s0 = inlined_call_operand.vmem [shape: bf16[128,64], index: 0, kind: input, shape index: {}]   ;;  %s1524_s3 = inlined_call_operand.vmem [shape: bf16[128,128], index: 3, kind: input, shape index: {}]   ;;  %s1525_s5 = inlined_call_operand.vmem [shape: bf16[128,128], index: 5, kind: input, shape index: {}]   ;;  %s1526_s2 = inlined_call_operand.vmem [shape: f32[1,256], index: 2, kind: input, shape index: {}]   ;;  %s1527_s7 = inlined_call_operand.vmem [shape: bf16[128,128], index: 7, kind: input, shape index: {}]   ;;  %s1528_s4 = inlined_call_operand.vmem [shape: f32[1,128], index: 4, kind: input, shape index: {}]   ;;  %s1529_s6 = inlined_call_operand.vmem [shape: f32[1,128], index: 6, kind: input, shape index: {}]   ;;  %s1530_s8 = inlined_call_operand.vmem [shape: f32[1,128], index: 8, kind: input, shape index: {}]   ;;  %s1531_s9 = inlined_call_operand.vmem [shape: f32[128,128], index: 9, kind: output, shape index: {}]  }
   0x1   :  { %v1111_v0 = vld [vmem:[%s1522_s1 + $0x4] ss:$8 sps:$4 sm:$0xff]   ;;  %206 = vmatprep.mubr.bf16.mxu0 %v1155_v1  ;;  %v1113_v2 = vld [vmem:[%s1522_s1] ss:$8 sps:$4 sm:$0xff]   ;;  %v1114_v3 = vld [vmem:[%s1522_s1 + $0x14] ss:$8 sps:$4 sm:$0xff]  }
   0x2   :  { %174 = vmatprep.subr.bf16.mxu0 %v1111_v0  ;;  %v1116_v4 = vld [vmem:[%s1522_s1 + $0x10] ss:$8 sps:$4 sm:$0xff]   ;;  %v1117_v5 = vld [vmem:[%s1522_s1 + $0x24] ss:$8 sps:$4 sm:$0xff]   ;;  %v1119_v6 = vld [vmem:[%s1522_s1 + $0x20] ss:$8 sps:$4 sm:$0xff]  }
   0x3   :  { %175 = vmatpush1.bf16.msra.mxu0 %v1113_v2  ;;  %v1120_v7 = vld [vmem:[%s1522_s1 + $0x34] ss:$8 sps:$4 sm:$0xff]   ;;  %v1122_v8 = vld [vmem:[%s1522_s1 + $0x30] ss:$8 sps:$4 sm:$0xff]   ;;  %v1123_v9 = vld [vmem:[%s1523_s0] sm:$0xff]   ;;  %v1289_v27 = vshrl.u32 %v59_v26, 7 }
   0x4   :  { %176 = vmatprep.subr.bf16.mxu0 %v1114_v3  ;;  %v1131_v10 = vld [vmem:[%s1524_s3] sm:$0xff]   ;;  %v1132_v11 = vld [vmem:[%s1524_s3 + $0x8] sm:$0xff]   ;;  %v1133_v12 = vld [vmem:[%s1524_s3 + $0x10] sm:$0xff]  }
   0x5   :  { %998 = vmatprep.subr.bf16.mxu1 %v1131_v10  ;;  %v1124_v13 = vld [vmem:[%s1523_s0 + $0x8] sm:$0xff]   ;;  %v1134_v14 = vld [vmem:[%s1524_s3 + $0x18] sm:$0xff]   ;;  %v1125_v15 = vld [vmem:[%s1523_s0 + $0x10] sm:$0xff]   ;;  %v61_v28 = vsub.s32 0, %v1289_v27 }
   0x6   :  { %999 = vmatpush3.bf16.msra.mxu1 %v1131_v10  ;;  %v1126_v16 = vld [vmem:[%s1523_s0 + $0x18] sm:$0xff]   ;;  %v1127_v17 = vld [vmem:[%s1523_s0 + $0x20] sm:$0xff]   ;;  %v1128_v18 = vld [vmem:[%s1523_s0 + $0x28] sm:$0xff]  }
   0x7   :  { %177 = vmatpush1.bf16.msra.mxu0 %v1116_v4  ;;  %1000 = vmatprep.subr.bf16.mxu1 %v1132_v11  ;;  %v1129_v19 = vld [vmem:[%s1523_s0 + $0x30] sm:$0xff]   ;;  %v1130_v20 = vld [vmem:[%s1523_s0 + $0x38] sm:$0xff]   ;;  %v1135_v21 = vld [vmem:[%s1524_s3 + $0x20] sm:$0xff]  }
   0x8   :  { %178 = vmatprep.subr.bf16.mxu0 %v1117_v5  ;;  %v1136_v22 = vld [vmem:[%s1524_s3 + $0x28] sm:$0xff]   ;;  %v1137_v23 = vld [vmem:[%s1524_s3 + $0x30] sm:$0xff]   ;;  %v1138_v24 = vld [vmem:[%s1524_s3 + $0x38] sm:$0xff]  }
   0x9   :  { %v1139_v25 = vld [vmem:[%s1525_s5] sm:$0xff]   ;;  %v1140_v49 = vld [vmem:[%s1525_s5 + $0x8] sm:$0xff]   ;;  %v1141_v56 = vld [vmem:[%s1525_s5 + $0x10] sm:$0xff]  }
   0xa   :  { %1001 = vmatpush3.bf16.msra.mxu1 %v1132_v11  ;;  %v1295_v29 = vld [vmem:[%s1526_s2] sm:$0x3]  ;;  %v1142_v60 = vld [vmem:[%s1525_s5 + $0x18] sm:$0xff]  }
   0xb   :  { %179 = vmatpush1.bf16.msra.mxu0 %v1119_v6  ;;  %1002 = vmatprep.subr.bf16.mxu1 %v1133_v12  ;;  %v1298_v30 = vrot.slane %v1295_v29, %v61_v28  ;;  %v1143_v3 = vld [vmem:[%s1525_s5 + $0x20] sm:$0xff]  }
   0xc   :  { %180 = vmatprep.subr.bf16.mxu0 %v1120_v7  ;;  %v1144_v7 = vld [vmem:[%s1525_s5 + $0x28] sm:$0xff]  }
   0xe   :  { %1003 = vmatpush3.bf16.msra.mxu1 %v1133_v12 }
   0xf   :  { %181 = vmatpush1.bf16.msra.mxu0 %v1122_v8  ;;  %1004 = vmatprep.subr.bf16.mxu1 %v1134_v14 }
  0x12   :  { %915 = vmatmul.mubr.msk.bf16.vlgmr.msra.gmra.mrb[0].mxu0 %vm149_vm0, %v1123_v9  ;;  %1005 = vmatpush3.bf16.msra.mxu1 %v1134_v14 }
  0x13   :  { %216 = vmatprep.mubr.bf16.mxu0 %v1155_v1  ;;  %1006 = vmatprep.subr.bf16.mxu1 %v1135_v21 }
  0x16   :  { %1007 = vmatpush3.bf16.msra.mxu1 %v1135_v21 }
  0x17   :  { %1008 = vmatprep.subr.bf16.mxu1 %v1136_v22 }
  0x1a   :  { %916 = vmatmul.mubr.msk.bf16.gmra.mrb[4].mxu0 %vm149_vm0, %v1124_v13  ;;  %1009 = vmatpush3.bf16.msra.mxu1 %v1136_v22 }
  0x1b   :  { %226 = vmatprep.mubr.bf16.mxu0 %v1155_v1  ;;  %1010 = vmatprep.subr.bf16.mxu1 %v1137_v23 }
  0x1e   :  { %1011 = vmatpush3.bf16.msra.mxu1 %v1137_v23 }
  0x1f   :  { %1012 = vmatprep.subr.bf16.mxu1 %v1138_v24 }
  0x22   :  { %917 = vmatmul.mubr.msk.bf16.gmra.mrb[8].mxu0 %vm149_vm0, %v1125_v15  ;;  %1013 = vmatpush3.bf16.msra.mxu1 %v1138_v24 }
  0x23   :  { %236 = vmatprep.mubr.bf16.mxu0 %v1155_v1  ;;  %1030 = vmatprep.subr.bf16.mxu1 %v1139_v25 }
  0x2a   :  { %918 = vmatmul.mubr.msk.bf16.gmra.mrb[12].mxu0 %vm149_vm0, %v1126_v16 }
  0x2b   :  { %246 = vmatprep.mubr.bf16.mxu0 %v1155_v1 }
  0x32   :  { %919 = vmatmul.mubr.msk.bf16.gmra.mrb[16].mxu0 %vm149_vm0, %v1127_v17 }
  0x33   :  { %256 = vmatprep.mubr.bf16.mxu0 %v1155_v1 }
  0x3a   :  { %920 = vmatmul.mubr.msk.bf16.gmra.mrb[20].mxu0 %vm149_vm0, %v1128_v18 }
  0x3b   :  { %266 = vmatprep.mubr.bf16.mxu0 %v1155_v1 }
  0x42   :  { %921 = vmatmul.mubr.msk.bf16.gmra.mrb[24].mxu0 %vm149_vm0, %v1129_v19 }
  0x43   :  { %276 = vmatprep.mubr.bf16.mxu0 %v1155_v1 }
  0x4a   :  { %922 = vmatmul.mubr.msk.bf16.gmra.mrb[28].mxu0 %vm149_vm0, %v1130_v20 }
  0xe5   :  { %v208_v31 = vpop.f32.mrb[0].mxu0 }
  0xe6   :  { %v209_v32 = vadd.f32 %v208_v31, %v1298_v30  ;;  %v1301_v33 = vpop.f32.mrb[1].mxu0 }
  0xe7   :  { %v212_v34 = vpop.f32.mrb[2].mxu0 }
  0xe8   :  { %v213_v35 = vadd.f32 %v212_v34, %v1298_v30  ;;  %v1304_v36 = vpop.f32.mrb[3].mxu0  ;;  %v287_v37 = vmax.f32 %v209_v32, 0.0 }
  0xea   :  { %v288_v38 = vmax.f32 %v213_v35, 0.0 }
  0xec   :  { %v303_v39 = vpack.c.bf16 %v288_v38, %v287_v37 }
  0xed   :  { %v218_v40 = vpop.f32.mrb[4].mxu0 }
  0xee   :  { %v219_v41 = vadd.f32 %v218_v40, %v1298_v30  ;;  %v1307_v42 = vpop.f32.mrb[5].mxu0  ;;  %1014 = vmatprep.mubr.bf16.mxu1 %v303_v39 }
  0xef   :  { %v222_v43 = vpop.f32.mrb[6].mxu0 }
  0xf0   :  { %v223_v44 = vadd.f32 %v222_v43, %v1298_v30  ;;  %v1310_v45 = vpop.f32.mrb[7].mxu0  ;;  %v289_v46 = vmax.f32 %v219_v41, 0.0 }
  0xf2   :  { %v290_v47 = vmax.f32 %v223_v44, 0.0 }
  0xf4   :  { %v304_v48 = vpack.c.bf16 %v290_v47, %v289_v46 }
  0xf5   :  { %v228_v50 = vpop.f32.mrb[8].mxu0 }
  0xf6   :  { %v229_v51 = vadd.f32 %v228_v50, %v1298_v30  ;;  %v1316_v52 = vpop.f32.mrb[9].mxu0  ;;  %1015 = vmatmul.mubr.bf16.vlgmr.msra.gmra.mrb[0].mxu1 %v304_v48 }
  0xf7   :  { %v232_v53 = vpop.f32.mrb[10].mxu0  ;;  %1031 = vmatpush3.bf16.msra.mxu1 %v1139_v25 }
  0xf8   :  { %v233_v54 = vadd.f32 %v232_v53, %v1298_v30  ;;  %v1319_v55 = vpop.f32.mrb[11].mxu0  ;;  %1032 = vmatprep.subr.bf16.mxu1 %v1140_v49  ;;  %v291_v57 = vmax.f32 %v229_v51, 0.0  ;;  %v1145_v51 = vld [vmem:[%s1525_s5 + $0x30] sm:$0xff]   ;;  %v1146_v53 = vld [vmem:[%s1525_s5 + $0x38] sm:$0xff]  }
  0xfa   :  { %v292_v58 = vmax.f32 %v233_v54, 0.0  ;;  %v1148_v54 = vld [vmem:[%s1527_s7 + $0x8] sm:$0xff]  }
  0xfb   :  { %1033 = vmatpush3.bf16.msra.mxu1 %v1140_v49 }
  0xfc   :  { %v305_v59 = vpack.c.bf16 %v292_v58, %v291_v57  ;;  %1034 = vmatprep.subr.bf16.mxu1 %v1141_v56  ;;  %v1150_v57 = vld [vmem:[%s1527_s7 + $0x18] sm:$0xff]   ;;  %v1151_v58 = vld [vmem:[%s1527_s7 + $0x20] sm:$0xff]  }
  0xfd   :  { %v238_v61 = vpop.f32.mrb[12].mxu0 }
  0xfe   :  { %v239_v62 = vadd.f32 %v238_v61, %v1298_v30  ;;  %v1328_v63 = vpop.f32.mrb[13].mxu0  ;;  %1018 = vmatprep.mubr.bf16.mxu1 %v305_v59  ;;  %v1387_v59 = vld [vmem:[%s1528_s4] ss:$0 sm:$0xff] }
  0xff   :  { %v242_v0 = vpop.f32.mrb[14].mxu0  ;;  %1035 = vmatpush3.bf16.msra.mxu1 %v1141_v56  ;;  %v1149_v56 = vld [vmem:[%s1527_s7 + $0x10] sm:$0xff]  }
 0x100   :  { %v243_v1 = vadd.f32 %v242_v0, %v1298_v30  ;;  %v1331_v2 = vpop.f32.mrb[15].mxu0  ;;  %1036 = vmatprep.subr.bf16.mxu1 %v1142_v60  ;;  %v293_v4 = vmax.f32 %v239_v62, 0.0 }
 0x102   :  { %v294_v5 = vmax.f32 %v243_v1, 0.0 }
 0x103   :  { %1037 = vmatpush3.bf16.msra.mxu1 %v1142_v60 }
 0x104   :  { %v306_v6 = vpack.c.bf16 %v294_v5, %v293_v4  ;;  %1038 = vmatprep.subr.bf16.mxu1 %v1143_v3 }
 0x105   :  { %v248_v8 = vpop.f32.mrb[16].mxu0 }
 0x106   :  { %v249_v9 = vadd.f32 %v248_v8, %v1298_v30  ;;  %v1340_v10 = vpop.f32.mrb[17].mxu0  ;;  %1019 = vmatmul.mubr.bf16.gmra.mrb[4].mxu1 %v306_v6 }
 0x107   :  { %v252_v11 = vpop.f32.mrb[18].mxu0  ;;  %1039 = vmatpush3.bf16.msra.mxu1 %v1143_v3 }
 0x108   :  { %v253_v12 = vadd.f32 %v252_v11, %v1298_v30  ;;  %v1343_v13 = vpop.f32.mrb[19].mxu0  ;;  %1040 = vmatprep.subr.bf16.mxu1 %v1144_v7  ;;  %v295_v14 = vmax.f32 %v249_v9, 0.0 }
 0x10a   :  { %v296_v15 = vmax.f32 %v253_v12, 0.0 }
 0x10b   :  { %1041 = vmatpush3.bf16.msra.mxu1 %v1144_v7 }
 0x10c   :  { %v307_v16 = vpack.c.bf16 %v296_v15, %v295_v14  ;;  %1042 = vmatprep.subr.bf16.mxu1 %v1145_v51 }
 0x10d   :  { %v258_v17 = vpop.f32.mrb[20].mxu0 }
 0x10e   :  { %v259_v18 = vadd.f32 %v258_v17, %v1298_v30  ;;  %v1346_v19 = vpop.f32.mrb[21].mxu0  ;;  %1022 = vmatprep.mubr.bf16.mxu1 %v307_v16 }
 0x10f   :  { %v262_v20 = vpop.f32.mrb[22].mxu0  ;;  %1043 = vmatpush3.bf16.msra.mxu1 %v1145_v51 }
 0x110   :  { %v263_v21 = vadd.f32 %v262_v20, %v1298_v30  ;;  %v1349_v22 = vpop.f32.mrb[23].mxu0  ;;  %v297_v23 = vmax.f32 %v259_v18, 0.0  ;;  %1044 = vmatprep.subr.bf16.mxu1 %v1146_v53 }
 0x112   :  { %v298_v24 = vmax.f32 %v263_v21, 0.0 }
 0x113   :  { %1045 = vmatpush3.bf16.msra.mxu1 %v1146_v53 }
 0x114   :  { %v308_v25 = vpack.c.bf16 %v298_v24, %v297_v23 }
 0x115   :  { %v268_v26 = vpop.f32.mrb[24].mxu0 }
 0x116   :  { %v269_v28 = vadd.f32 %v268_v26, %v1298_v30  ;;  %v1352_v31 = vpop.f32.mrb[25].mxu0  ;;  %1023 = vmatmul.mubr.bf16.gmra.mrb[8].mxu1 %v308_v25 }
 0x117   :  { %v272_v32 = vpop.f32.mrb[26].mxu0 }
 0x118   :  { %v273_v34 = vadd.f32 %v272_v32, %v1298_v30  ;;  %v1355_v35 = vpop.f32.mrb[27].mxu0  ;;  %v299_v37 = vmax.f32 %v269_v28, 0.0 }
 0x11a   :  { %v300_v38 = vmax.f32 %v273_v34, 0.0 }
 0x11c   :  { %v309_v39 = vpack.c.bf16 %v300_v38, %v299_v37 }
 0x11d   :  { %v278_v40 = vpop.f32.mrb[28].mxu0 }
 0x11e   :  { %v279_v41 = vadd.f32 %v278_v40, %v1298_v30  ;;  %v1358_v43 = vpop.f32.mrb[29].mxu0  ;;  %1026 = vmatprep.mubr.bf16.mxu1 %v309_v39 }
 0x11f   :  { %v282_v44 = vpop.f32.mrb[30].mxu0 }
 0x120   :  { %v283_v46 = vadd.f32 %v282_v44, %v1298_v30  ;;  %v1361_v47 = vpop.f32.mrb[31].mxu0  ;;  %v301_v48 = vmax.f32 %v279_v41, 0.0  ;;  %v1147_v30 = vld [vmem:[%s1527_s7] sm:$0xff]  }
 0x121   :  { %1062 = vmatprep.subr.bf16.mxu0 %v1147_v30  ;;  %1094 = vmatprep.subr.bf16.mxu1 %v1147_v30 }
 0x122   :  { %v302_v49 = vmax.f32 %v283_v46, 0.0  ;;  %1063 = vmatpush3.bf16.msra.mxu0 %v1147_v30 }
 0x123   :  { %1064 = vmatprep.subr.bf16.mxu0 %v1148_v54 }
 0x124   :  { %v310_v50 = vpack.c.bf16 %v302_v49, %v301_v48 }
 0x126   :  { %1027 = vmatmul.mubr.bf16.gmra.mrb[12].mxu1 %v310_v50  ;;  %1065 = vmatpush3.bf16.msra.mxu0 %v1148_v54 }
 0x127   :  { %1066 = vmatprep.subr.bf16.mxu0 %v1149_v56 }
 0x12a   :  { %1067 = vmatpush3.bf16.msra.mxu0 %v1149_v56 }
 0x12b   :  { %1068 = vmatprep.subr.bf16.mxu0 %v1150_v57 }
 0x12e   :  { %1069 = vmatpush3.bf16.msra.mxu0 %v1150_v57 }
 0x12f   :  { %1070 = vmatprep.subr.bf16.mxu0 %v1151_v58 }
 0x132   :  { %1071 = vmatpush3.bf16.msra.mxu0 %v1151_v58 }
 0x1c9   :  { %v1016_v60 = vpop.f32.mrb[0].mxu1 }
 0x1ca   :  { %v425_v61 = vadd.f32 %v1016_v60, %v1387_v59  ;;  %v416_v62 = vpop.f32.mrb[1].mxu1 }
 0x1cb   :  { %v417_v0 = vadd.f32 %v1387_v59, %v416_v62  ;;  %v1017_v1 = vpop.f32.mrb[2].mxu1 }
 0x1cc   :  { %v428_v3 = vadd.f32 %v1017_v1, %v1387_v59  ;;  %v419_v4 = vpop.f32.mrb[3].mxu1  ;;  %v481_v6 = vmax.f32 %v425_v61, 0.0 }
 0x1cd   :  { %v420_v5 = vadd.f32 %v1387_v59, %v419_v4  ;;  %v479_v8 = vmax.f32 %v417_v0, 0.0 }
 0x1ce   :  { %v482_v7 = vmax.f32 %v428_v3, 0.0 }
 0x1cf   :  { %v480_v9 = vmax.f32 %v420_v5, 0.0 }
 0x1d0   :  { %v496_v11 = vpack.c.bf16 %v482_v7, %v481_v6 }
 0x1d1   :  { %v495_v12 = vpack.c.bf16 %v480_v9, %v479_v8  ;;  %v1152_v9 = vld [vmem:[%s1527_s7 + $0x28] sm:$0xff]  }
 0x1d2   :  { %1072 = vmatprep.subr.bf16.mxu0 %v1152_v9 }
 0x1d3   :  { %1046 = vmatprep.mubr.bf16.mxu1 %v495_v12  ;;  %1073 = vmatpush3.bf16.msra.mxu0 %v1152_v9  ;;  %v65_v12 = vsub.s32 1, %v1289_v27 }
 0x1d4   :  { %1047 = vmatmul.mubr.bf16.vlgmr.msra.gmra.mrb[16].mxu1 %v496_v11  ;;  %v1154_v11 = vld [vmem:[%s1527_s7 + $0x38] sm:$0xff]  }
 0x1d5   :  { %1102 = vmatpush3.bf16.msra.mxu1 %v1147_v30 }
 0x1d6   :  { %1095 = vmatprep.subr.bf16.mxu1 %v1148_v54 }
 0x1d9   :  { %v1020_v14 = vpop.f32.mrb[4].mxu1  ;;  %1103 = vmatpush3.bf16.msra.mxu1 %v1148_v54 }
 0x1da   :  { %v441_v15 = vadd.f32 %v1020_v14, %v1387_v59  ;;  %v432_v16 = vpop.f32.mrb[5].mxu1  ;;  %1096 = vmatprep.subr.bf16.mxu1 %v1149_v56  ;;  %v1418_v14 = vld [vmem:[%s1529_s6] ss:$0 sm:$0xff] }
 0x1db   :  { %v433_v17 = vadd.f32 %v1387_v59, %v432_v16  ;;  %v1021_v18 = vpop.f32.mrb[6].mxu1 }
 0x1dc   :  { %v444_v20 = vadd.f32 %v1021_v18, %v1387_v59  ;;  %v435_v21 = vpop.f32.mrb[7].mxu1  ;;  %v485_v24 = vmax.f32 %v441_v15, 0.0  ;;  %v1421_v15 = vrot.slane %v1295_v29, %v65_v12 }
 0x1dd   :  { %v436_v23 = vadd.f32 %v1387_v59, %v435_v21  ;;  %1104 = vmatpush3.bf16.msra.mxu1 %v1149_v56  ;;  %v483_v26 = vmax.f32 %v433_v17, 0.0 }
 0x1de   :  { %v486_v25 = vmax.f32 %v444_v20, 0.0  ;;  %1097 = vmatprep.subr.bf16.mxu1 %v1150_v57  ;;  %v251_v12 = vadd.f32 %v1340_v10, %v1421_v15 }
 0x1df   :  { %v484_v28 = vmax.f32 %v436_v23, 0.0  ;;  %v221_v23 = vadd.f32 %v1307_v42, %v1421_v15 }
 0x1e0   :  { %v498_v32 = vpack.c.bf16 %v486_v25, %v485_v24 }
 0x1e1   :  { %v497_v34 = vpack.c.bf16 %v484_v28, %v483_v26  ;;  %1105 = vmatpush3.bf16.msra.mxu1 %v1150_v57  ;;  %v211_v26 = vadd.f32 %v1301_v33, %v1421_v15 }
 0x1e2   :  { %1098 = vmatprep.subr.bf16.mxu1 %v1151_v58 }
 0x1e3   :  { %1050 = vmatprep.mubr.bf16.mxu1 %v497_v34 }
 0x1e4   :  { %1051 = vmatmul.mubr.bf16.gmra.mrb[20].mxu1 %v498_v32  ;;  %v225_v32 = vadd.f32 %v1310_v45, %v1421_v15 }
 0x1e5   :  { %1106 = vmatpush3.bf16.msra.mxu1 %v1151_v58 }
 0x1e6   :  { %1099 = vmatprep.subr.bf16.mxu1 %v1152_v9 }
 0x1e9   :  { %v1024_v37 = vpop.f32.mrb[8].mxu1  ;;  %1107 = vmatpush3.bf16.msra.mxu1 %v1152_v9  ;;  %v261_v9 = vadd.f32 %v1346_v19, %v1421_v15 }
 0x1ea   :  { %v457_v38 = vadd.f32 %v1024_v37, %v1387_v59  ;;  %v448_v39 = vpop.f32.mrb[9].mxu1 }
 0x1eb   :  { %v449_v40 = vadd.f32 %v1387_v59, %v448_v39  ;;  %v1025_v41 = vpop.f32.mrb[10].mxu1 }
 0x1ec   :  { %v460_v44 = vadd.f32 %v1025_v41, %v1387_v59  ;;  %v451_v46 = vpop.f32.mrb[11].mxu1  ;;  %v489_v49 = vmax.f32 %v457_v38, 0.0  ;;  %v215_v38 = vadd.f32 %v1304_v36, %v1421_v15 }
 0x1ed   :  { %v452_v48 = vadd.f32 %v1387_v59, %v451_v46  ;;  %v487_v51 = vmax.f32 %v449_v40, 0.0 }
 0x1ee   :  { %v490_v50 = vmax.f32 %v460_v44, 0.0 }
 0x1ef   :  { %v488_v53 = vmax.f32 %v452_v48, 0.0 }
 0x1f0   :  { %v500_v30 = vpack.c.bf16 %v490_v50, %v489_v49 }
 0x1f1   :  { %v499_v54 = vpack.c.bf16 %v488_v53, %v487_v51  ;;  %v241_v51 = vadd.f32 %v1328_v63, %v1421_v15 }
 0x1f3   :  { %1054 = vmatprep.mubr.bf16.mxu1 %v499_v54  ;;  %v231_v54 = vadd.f32 %v1316_v52, %v1421_v15 }
 0x1f4   :  { %1055 = vmatmul.mubr.bf16.gmra.mrb[24].mxu1 %v500_v30 }
 0x1f9   :  { %v1028_v56 = vpop.f32.mrb[12].mxu1 }
 0x1fa   :  { %v473_v57 = vadd.f32 %v1028_v56, %v1387_v59  ;;  %v464_v58 = vpop.f32.mrb[13].mxu1 }
 0x1fb   :  { %v465_v60 = vadd.f32 %v1387_v59, %v464_v58  ;;  %v1029_v61 = vpop.f32.mrb[14].mxu1  ;;  %v245_v58 = vadd.f32 %v1331_v2, %v1421_v15 }
 0x1fc   :  { %v476_v62 = vadd.f32 %v1029_v61, %v1387_v59  ;;  %v467_v0 = vpop.f32.mrb[15].mxu1  ;;  %v493_v3 = vmax.f32 %v473_v57, 0.0 }
 0x1fd   :  { %v468_v1 = vadd.f32 %v1387_v59, %v467_v0  ;;  %v491_v5 = vmax.f32 %v465_v60, 0.0  ;;  %v1153_v59 = vld [vmem:[%s1527_s7 + $0x30] sm:$0xff]  }
 0x1fe   :  { %v494_v4 = vmax.f32 %v476_v62, 0.0  ;;  %1074 = vmatprep.subr.bf16.mxu0 %v1153_v59  ;;  %1100 = vmatprep.subr.bf16.mxu1 %v1153_v59  ;;  %v235_v62 = vadd.f32 %v1319_v55, %v1421_v15 }
 0x1ff   :  { %v492_v6 = vmax.f32 %v468_v1, 0.0  ;;  %1075 = vmatpush3.bf16.msra.mxu0 %v1153_v59  ;;  %1108 = vmatpush3.bf16.msra.mxu1 %v1153_v59 }
 0x200   :  { %v502_v7 = vpack.c.bf16 %v494_v4, %v493_v3  ;;  %1076 = vmatprep.subr.bf16.mxu0 %v1154_v11  ;;  %1101 = vmatprep.subr.bf16.mxu1 %v1154_v11 }
 0x201   :  { %v501_v8 = vpack.c.bf16 %v492_v6, %v491_v5 }
 0x203   :  { %1058 = vmatprep.mubr.bf16.mxu1 %v501_v8  ;;  %1077 = vmatpush3.bf16.msra.mxu0 %v1154_v11 }
 0x204   :  { %1059 = vmatmul.mubr.bf16.gmra.mrb[28].mxu1 %v502_v7 }
 0x205   :  { %1109 = vmatpush3.bf16.msra.mxu1 %v1154_v11 }
 0x2a7   :  { %v1048_v16 = vpop.f32.mrb[16].mxu1 }
 0x2a8   :  { %v617_v17 = vadd.f32 %v1048_v16, %v1418_v14  ;;  %v608_v18 = vpop.f32.mrb[17].mxu1 }
 0x2a9   :  { %v609_v20 = vadd.f32 %v1418_v14, %v608_v18  ;;  %v1049_v21 = vpop.f32.mrb[18].mxu1  ;;  %v265_v18 = vadd.f32 %v1349_v22, %v1421_v15 }
 0x2aa   :  { %v673_v24 = vmax.f32 %v617_v17, 0.0  ;;  %v620_v27 = vadd.f32 %v1049_v21, %v1418_v14  ;;  %v611_v25 = vpop.f32.mrb[19].mxu1 }
 0x2ab   :  { %v671_v28 = vmax.f32 %v609_v20, 0.0  ;;  %v612_v29 = vadd.f32 %v1418_v14, %v611_v25 }
 0x2ac   :  { %v689_v34 = vadd.f32 %v673_v24, %v221_v23  ;;  %v674_v37 = vmax.f32 %v620_v27, 0.0  ;;  %v255_v23 = vadd.f32 %v1343_v13, %v1421_v15 }
 0x2ad   :  { %v687_v39 = vadd.f32 %v671_v28, %v211_v26  ;;  %v672_v42 = vmax.f32 %v612_v29, 0.0 }
 0x2ae   :  { %v690_v40 = vadd.f32 %v674_v37, %v225_v32  ;;  %v281_v37 = vadd.f32 %v1358_v43, %v1421_v15 }
 0x2af   :  { %v688_v41 = vadd.f32 %v672_v42, %v215_v38  ;;  %v271_v42 = vadd.f32 %v1352_v31, %v1421_v15  ;;  %v941_v31 = vld [vmem:[%s1530_s8] ss:$0 sm:$0xff] }
 0x2b0   :  { %v704_v44 = vpack.c.bf16 %v690_v40, %v689_v34 }
 0x2b1   :  { %v703_v46 = vpack.c.bf16 %v688_v41, %v687_v39 }
 0x2b3   :  { %1078 = vmatprep.mubr.bf16.mxu0 %v703_v46 }
 0x2b4   :  { %1079 = vmatmul.mubr.bf16.vlgmr.msra.gmra.mrb[32].mxu0 %v704_v44  ;;  %v285_v44 = vadd.f32 %v1361_v47, %v1421_v15 }
 0x2b7   :  { %v1052_v33 = vpop.f32.mrb[20].mxu1 }
 0x2b8   :  { %v633_v48 = vadd.f32 %v1052_v33, %v1418_v14  ;;  %v624_v49 = vpop.f32.mrb[21].mxu1 }
 0x2b9   :  { %v625_v50 = vadd.f32 %v1418_v14, %v624_v49  ;;  %v1053_v45 = vpop.f32.mrb[22].mxu1 }
 0x2ba   :  { %v677_v53 = vmax.f32 %v633_v48, 0.0  ;;  %v636_v36 = vadd.f32 %v1053_v45, %v1418_v14  ;;  %v627_v30 = vpop.f32.mrb[23].mxu1  ;;  %v275_v48 = vadd.f32 %v1355_v35, %v1421_v15 }
 0x2bb   :  { %v675_v56 = vmax.f32 %v625_v50, 0.0  ;;  %v628_v57 = vadd.f32 %v1418_v14, %v627_v30 }
 0x2bc   :  { %v693_v60 = vadd.f32 %v677_v53, %v241_v51  ;;  %v678_v61 = vmax.f32 %v636_v36, 0.0 }
 0x2bd   :  { %v691_v0 = vadd.f32 %v675_v56, %v231_v54  ;;  %v676_v63 = vmax.f32 %v628_v57, 0.0 }
 0x2be   :  { %v694_v1 = vadd.f32 %v678_v61, %v245_v58 }
 0x2bf   :  { %v692_v3 = vadd.f32 %v676_v63, %v235_v62 }
 0x2c0   :  { %v706_v4 = vpack.c.bf16 %v694_v1, %v693_v60 }
 0x2c1   :  { %v705_v5 = vpack.c.bf16 %v692_v3, %v691_v0 }
 0x2c3   :  { %1082 = vmatprep.mubr.bf16.mxu0 %v705_v5 }
 0x2c4   :  { %1083 = vmatmul.mubr.bf16.gmra.mrb[36].mxu0 %v706_v4 }
 0x2c7   :  { %v1056_v52 = vpop.f32.mrb[24].mxu1 }
 0x2c8   :  { %v649_v6 = vadd.f32 %v1056_v52, %v1418_v14  ;;  %v640_v7 = vpop.f32.mrb[25].mxu1 }
 0x2c9   :  { %v641_v8 = vadd.f32 %v1418_v14, %v640_v7  ;;  %v1057_v2 = vpop.f32.mrb[26].mxu1 }
 0x2ca   :  { %v681_v59 = vmax.f32 %v649_v6, 0.0  ;;  %v652_v55 = vadd.f32 %v1057_v2, %v1418_v14  ;;  %v643_v11 = vpop.f32.mrb[27].mxu1 }
 0x2cb   :  { %v679_v16 = vmax.f32 %v641_v8, 0.0  ;;  %v644_v17 = vadd.f32 %v1418_v14, %v643_v11 }
 0x2cc   :  { %v697_v20 = vadd.f32 %v681_v59, %v261_v9  ;;  %v682_v21 = vmax.f32 %v652_v55, 0.0 }
 0x2cd   :  { %v695_v24 = vadd.f32 %v679_v16, %v251_v12  ;;  %v680_v19 = vmax.f32 %v644_v17, 0.0 }
 0x2ce   :  { %v698_v27 = vadd.f32 %v682_v21, %v265_v18 }
 0x2cf   :  { %v696_v25 = vadd.f32 %v680_v19, %v255_v23 }
 0x2d0   :  { %v708_v26 = vpack.c.bf16 %v698_v27, %v697_v20 }
 0x2d1   :  { %v707_v28 = vpack.c.bf16 %v696_v25, %v695_v24 }
 0x2d3   :  { %1086 = vmatprep.mubr.bf16.mxu0 %v707_v28 }
 0x2d4   :  { %1087 = vmatmul.mubr.bf16.gmra.mrb[40].mxu0 %v708_v26 }
 0x2d7   :  { %v1060_v10 = vpop.f32.mrb[28].mxu1 }
 0x2d8   :  { %v665_v29 = vadd.f32 %v1060_v10, %v1418_v14  ;;  %v656_v32 = vpop.f32.mrb[29].mxu1 }
 0x2d9   :  { %v657_v34 = vadd.f32 %v1418_v14, %v656_v32  ;;  %v1061_v22 = vpop.f32.mrb[30].mxu1 }
 0x2da   :  { %v685_v38 = vmax.f32 %v665_v29, 0.0  ;;  %v668_v13 = vadd.f32 %v1061_v22, %v1418_v14  ;;  %v659_v39 = vpop.f32.mrb[31].mxu1 }
 0x2db   :  { %v683_v40 = vmax.f32 %v657_v34, 0.0  ;;  %v660_v41 = vadd.f32 %v1418_v14, %v659_v39 }
 0x2dc   :  { %v701_v46 = vadd.f32 %v685_v38, %v281_v37  ;;  %v686_v33 = vmax.f32 %v668_v13, 0.0 }
 0x2dd   :  { %v699_v49 = vadd.f32 %v683_v40, %v271_v42  ;;  %v684_v43 = vmax.f32 %v660_v41, 0.0 }
 0x2de   :  { %v702_v50 = vadd.f32 %v686_v33, %v285_v44 }
 0x2df   :  { %v700_v45 = vadd.f32 %v684_v43, %v275_v48 }
 0x2e0   :  { %v710_v51 = vpack.c.bf16 %v702_v50, %v701_v46 }
 0x2e1   :  { %v709_v53 = vpack.c.bf16 %v700_v45, %v699_v49 }
 0x2e3   :  { %1090 = vmatprep.mubr.bf16.mxu1 %v709_v53 }
 0x2e4   :  { %1091 = vmatmul.mubr.bf16.vlgmr.msra.gmra.mrb[32].mxu1 %v710_v51 }
 0x387   :  { %v1080_v14 = vpop.f32.mrb[32].mxu0 }
 0x388   :  { %v825_v36 = vadd.f32 %v1080_v14, %v941_v31  ;;  %v816_v47 = vpop.f32.mrb[33].mxu0 }
 0x389   :  { %v817_v30 = vadd.f32 %v941_v31, %v816_v47  ;;  %v1081_v54 = vpop.f32.mrb[34].mxu0 }
 0x38a   :  { %881 = vst [vmem:[%s1531_s9 + $0x10] sm:$0xff] %v825_v36  ;;  %v828_v35 = vadd.f32 %v1081_v54, %v941_v31  ;;  %v819_v15 = vpop.f32.mrb[35].mxu0 }
 0x38b   :  { %879 = vst [vmem:[%s1531_s9] sm:$0xff] %v817_v30  ;;  %v820_v56 = vadd.f32 %v941_v31, %v819_v15 }
 0x38c   :  { %882 = vst [vmem:[%s1531_s9 + $0x18] sm:$0xff] %v828_v35 }
 0x38d   :  { %880 = vst [vmem:[%s1531_s9 + $0x8] sm:$0xff] %v820_v56 }
 0x397   :  { %v1084_v57 = vpop.f32.mrb[36].mxu0 }
 0x398   :  { %v841_v58 = vadd.f32 %v1084_v57, %v941_v31  ;;  %v832_v60 = vpop.f32.mrb[37].mxu0 }
 0x399   :  { %v833_v61 = vadd.f32 %v941_v31, %v832_v60  ;;  %v1085_v62 = vpop.f32.mrb[38].mxu0 }
 0x39a   :  { %885 = vst [vmem:[%s1531_s9 + $0x30] sm:$0xff] %v841_v58  ;;  %v844_v0 = vadd.f32 %v1085_v62, %v941_v31  ;;  %v835_v63 = vpop.f32.mrb[39].mxu0 }
 0x39b   :  { %883 = vst [vmem:[%s1531_s9 + $0x20] sm:$0xff] %v833_v61  ;;  %v836_v1 = vadd.f32 %v941_v31, %v835_v63 }
 0x39c   :  { %886 = vst [vmem:[%s1531_s9 + $0x38] sm:$0xff] %v844_v0 }
 0x39d   :  { %884 = vst [vmem:[%s1531_s9 + $0x28] sm:$0xff] %v836_v1 }
 0x3a7   :  { %v1088_v3 = vpop.f32.mrb[40].mxu0 }
 0x3a8   :  { %v857_v4 = vadd.f32 %v1088_v3, %v941_v31  ;;  %v848_v5 = vpop.f32.mrb[41].mxu0 }
 0x3a9   :  { %v849_v52 = vadd.f32 %v941_v31, %v848_v5  ;;  %v1089_v6 = vpop.f32.mrb[42].mxu0 }
 0x3aa   :  { %889 = vst [vmem:[%s1531_s9 + $0x50] sm:$0xff] %v857_v4  ;;  %v860_v7 = vadd.f32 %v1089_v6, %v941_v31  ;;  %v851_v8 = vpop.f32.mrb[43].mxu0 }
 0x3ab   :  { %887 = vst [vmem:[%s1531_s9 + $0x40] sm:$0xff] %v849_v52  ;;  %v852_v2 = vadd.f32 %v941_v31, %v851_v8 }
 0x3ac   :  { %890 = vst [vmem:[%s1531_s9 + $0x58] sm:$0xff] %v860_v7 }
 0x3ad   :  { %888 = vst [vmem:[%s1531_s9 + $0x48] sm:$0xff] %v852_v2 }
 0x3b7   :  { %v1092_v9 = vpop.f32.mrb[32].mxu1 }
 0x3b8   :  { %v873_v59 = vadd.f32 %v1092_v9, %v941_v31  ;;  %v864_v55 = vpop.f32.mrb[33].mxu1 }
 0x3b9   :  { %v865_v11 = vadd.f32 %v941_v31, %v864_v55  ;;  %v1093_v12 = vpop.f32.mrb[34].mxu1 }
 0x3ba   :  { %893 = vst [vmem:[%s1531_s9 + $0x70] sm:$0xff] %v873_v59  ;;  %v876_v16 = vadd.f32 %v1093_v12, %v941_v31  ;;  %v867_v17 = vpop.f32.mrb[35].mxu1 }
 0x3bb   :  { %891 = vst [vmem:[%s1531_s9 + $0x60] sm:$0xff] %v865_v11  ;;  %v868_v18 = vadd.f32 %v941_v31, %v867_v17 }
 0x3bc   :  { %894 = vst [vmem:[%s1531_s9 + $0x78] sm:$0xff] %v876_v16 }
 0x3bd   :  { %892 = vst [vmem:[%s1531_s9 + $0x68] sm:$0xff] %v868_v18 }

</bundles_post_ra>
